<compile_context>
chip_gen: v5e
topology: v5e:2x2
jax: 0.10.0
libtpu: 0.0.40
codegen_flags: <defaults>
</compile_context>

<pallas_src>
import numpy as np
import jax
import jax.numpy as jnp
from jax.experimental import pallas as pl
from jax.experimental.pallas import tpu as pltpu

PAD_ID = 0
DOLLAR = ord("$")          # terminal symbol '$'
L = 128                    # max (padded) sequence length, lane dimension
TB = 8                     # batch rows per grid step, sublane dimension


def _combiner_kernel(pos_ref, sollen_ref, sublen_ref, explen_ref, final_ref,
                     expr_ref, sol_ref, out_ref):
    """Processes TB batch rows per grid step.

    expr_ref / sol_ref / out_ref : (TB, L) int32 VMEM tiles
    scalar refs                  : (B_pad,) int32 SMEM arrays
    """
    g = pl.program_id(0)
    j = jax.lax.broadcasted_iota(jnp.int32, (1, L), 1)   # output position

    expr_tile = expr_ref[...]          # (TB, L) int32
    sol_tile = sol_ref[...]            # (TB, L) int32

    rows = []
    for t in range(TB):                # static unroll over the 8 sublanes
        r = g * TB + t
        pos = pos_ref[r]
        sol_len = sollen_ref[r]
        sub_len = sublen_ref[r]
        exp_len = explen_ref[r]
        is_final = final_ref[r]

        # solution == '$'  =>  expression unchanged, i.e. splice a zero-length
        # solution over a zero-length sub-expression.
        eff_sol = jnp.where(is_final != 0, 0, sol_len)
        eff_sub = jnp.where(is_final != 0, 0, sub_len)

        expr_row = expr_tile[t:t + 1, :]                  # (1, L)
        sol_row = sol_tile[t:t + 1, :]                    # (1, L)

        # Tail gather: out[j] = expr[j - eff_sol + eff_sub] for j past the
        # splice.  roll(x, s)[j] = x[(j - s) mod L]  =>  s = eff_sol - eff_sub.
        shift_expr = (eff_sol - eff_sub + L) % L          # in [0, L)
        expr_tail = pltpu.roll(expr_row, shift=shift_expr, axis=1)
        # Solution gather: out[j] = sol[j - pos] inside the splice window.
        sol_shift = pltpu.roll(sol_row, shift=pos, axis=1)

        new_len = exp_len - eff_sub + eff_sol
        in_head = j < pos
        in_sol = jnp.logical_and(j >= pos, j < pos + eff_sol)
        row = jnp.where(in_head, expr_row,
                        jnp.where(in_sol, sol_shift, expr_tail))
        row = jnp.where(j < new_len, row, PAD_ID)
        rows.append(row)

    # Single sublane-dense (8,128) store instead of 8 masked partial stores.
    out_ref[...] = jnp.concatenate(rows, axis=0)


def combiner(expression, position, solution, sub_expressions_length,
             expression_length, solution_length):
    """JAX wrapper reproducing Combiner.forward on padded int32 token arrays.

    expression        : (B, L) int32, PAD_ID padded
    position          : (B,)   int32
    solution          : (B, L) int32, PAD_ID padded
    sub_expressions_length, expression_length, solution_length : (B,) int32
    Returns (new_expression (B, L) int32, new_length (B,) int32).
    """
    B = expression.shape[0]
    assert expression.shape[1] == L and solution.shape[1] == L

    # '$'-check ("is this the final solution?") -- matches the PyTorch
    # ''.join(solution) == '$' test: exactly one token and it is '$'.
    is_final = jnp.logical_and(solution_length == 1,
                               solution[:, 0] == DOLLAR).astype(jnp.int32)

    # Pad batch to a multiple of TB so every grid step sees a full tile.
    B_pad = ((B + TB - 1) // TB) * TB
    pad = B_pad - B

    def pad1(x, val=0):
        return jnp.pad(x, ((0, pad),), constant_values=val) if pad else x

    def pad2(x):
        return jnp.pad(x, ((0, pad), (0, 0))) if pad else x

    expr_p = pad2(expression.astype(jnp.int32))
    sol_p = pad2(solution.astype(jnp.int32))
    pos_p = pad1(position.astype(jnp.int32))
    sollen_p = pad1(solution_length.astype(jnp.int32))
    sublen_p = pad1(sub_expressions_length.astype(jnp.int32))
    explen_p = pad1(expression_length.astype(jnp.int32))
    final_p = pad1(is_final, val=1)

    smem_spec = pl.BlockSpec(memory_space=pltpu.MemorySpace.SMEM)
    tok_spec = pl.BlockSpec((TB, L), lambda g: (g, 0))

    out = pl.pallas_call(
        _combiner_kernel,
        out_shape=jax.ShapeDtypeStruct((B_pad, L), jnp.int32),
        grid=(B_pad // TB,),
        in_specs=[smem_spec, smem_spec, smem_spec, smem_spec, smem_spec,
                  tok_spec, tok_spec],
        out_specs=tok_spec,
        compiler_params=pltpu.CompilerParams(
            dimension_semantics=("parallel",)),   # rows independent -> megacore
    )(pos_p, sollen_p, sublen_p, explen_p, final_p, expr_p, sol_p)

    new_len = jnp.where(is_final != 0, expression_length,
                        expression_length - sub_expressions_length
                        + solution_length)
    return out[:B], new_len


def _reference(expr_tok, position, sol_tok, sub_len, expr_len, sol_len):
    """Pure-python port of Combiner._pool on token lists (ground truth)."""
    B = expr_tok.shape[0]
    outs = np.zeros_like(expr_tok)
    lens = np.zeros(B, np.int32)
    for b in range(B):
        e = list(expr_tok[b, :expr_len[b]])
        s = list(sol_tok[b, :sol_len[b]])
        if s == [DOLLAR]:                       # solution == '$' -> unchanged
            ne = e
        else:
            p, sl = int(position[b]), int(sub_len[b])
            ne = e[:p] + s + e[p + sl:]
        outs[b, :len(ne)] = ne
        lens[b] = len(ne)
    return outs, lens


if __name__ == "__main__":
    key = jax.random.PRNGKey(0)
    k_expr, k_sol = jax.random.split(key, 2)

    B = 4
    expr_len = np.array([20, 13, 32, 9], dtype=np.int32)
    sol_len = np.array([3, 1, 7, 1], dtype=np.int32)
    position = np.array([4, 2, 10, 0], dtype=np.int32)
    sub_len = np.array([6, 5, 3, 4], dtype=np.int32)

    # Deterministic random token ids (>= 40, so they never collide with '$').
    re = np.asarray(jax.random.randint(k_expr, (B, L), 40, 120, dtype=jnp.int32))
    rs = np.asarray(jax.random.randint(k_sol, (B, L), 40, 120, dtype=jnp.int32))
    expr_tok = np.zeros((B, L), np.int32)
    sol_tok = np.zeros((B, L), np.int32)
    for b in range(B):
        expr_tok[b, :expr_len[b]] = re[b, :expr_len[b]]
        sol_tok[b, :sol_len[b]] = rs[b, :sol_len[b]]
    # Row 1: the solution is the terminal symbol '$' -> expression unchanged.
    sol_tok[1, 0] = DOLLAR

    out_tok, out_len = combiner(jnp.asarray(expr_tok), jnp.asarray(position),
                                jnp.asarray(sol_tok), jnp.asarray(sub_len),
                                jnp.asarray(expr_len), jnp.asarray(sol_len))
    out_tok = np.asarray(jax.block_until_ready(out_tok))
    out_len = np.asarray(jax.block_until_ready(out_len))

    ref_tok, ref_len = _reference(expr_tok, position, sol_tok, sub_len,
                                  expr_len, sol_len)

    assert np.array_equal(out_len, ref_len), (out_len, ref_len)
    assert np.array_equal(out_tok, ref_tok), (out_tok, ref_tok)
    print("KERNEL_OK")
</pallas_src>

<mosaic_0001>
module attributes {stable_mosaic.version = 11 : i64} {
  func.func @_combiner_kernel(%arg0: i32, %arg1: memref<8xi32, #tpu.memory_space<smem>>, %arg2: memref<8xi32, #tpu.memory_space<smem>>, %arg3: memref<8xi32, #tpu.memory_space<smem>>, %arg4: memref<8xi32, #tpu.memory_space<smem>>, %arg5: memref<8xi32, #tpu.memory_space<smem>>, %arg6: memref<8x128xi32, #tpu.memory_space<vmem>>, %arg7: memref<8x128xi32, #tpu.memory_space<vmem>>, %arg8: memref<8x128xi32, #tpu.memory_space<vmem>>) attributes {dimension_semantics = [#tpu.dimension_semantics<parallel>], iteration_bounds = array<i64: 1>, scalar_prefetch = 0 : i64, scratch_operands = 0 : i64, tpu.core_type = #tpu.core_type<tc>, window_params = [{transform_indices = @transform_0, window_bounds = array<i64: 8>}, {transform_indices = @transform_1, window_bounds = array<i64: 8>}, {transform_indices = @transform_2, window_bounds = array<i64: 8>}, {transform_indices = @transform_3, window_bounds = array<i64: 8>}, {transform_indices = @transform_4, window_bounds = array<i64: 8>}, {transform_indices = @transform_5, window_bounds = array<i64: 8, 128>}, {transform_indices = @transform_6, window_bounds = array<i64: 8, 128>}, {transform_indices = @transform_7, window_bounds = array<i64: 8, 128>}]} {
    %0 = tpu.iota {dimensions = array<i32: 1>} : vector<1x128xi32>
    %c0 = arith.constant 0 : index
    %c0_0 = arith.constant 0 : index
    %1 = vector.load %arg6[%c0, %c0_0] : memref<8x128xi32, #tpu.memory_space<vmem>>, vector<8x128xi32>
    %c0_1 = arith.constant 0 : index
    %c0_2 = arith.constant 0 : index
    %2 = vector.load %arg7[%c0_1, %c0_2] : memref<8x128xi32, #tpu.memory_space<vmem>>, vector<8x128xi32>
    %c8_i32 = arith.constant 8 : i32
    %3 = arith.muli %arg0, %c8_i32 : i32
    %c0_i32 = arith.constant 0 : i32
    %4 = arith.addi %3, %c0_i32 : i32
    %5 = arith.index_cast %4 : i32 to index
    %6 = memref.load %arg1[%5] : memref<8xi32, #tpu.memory_space<smem>>
    %7 = arith.index_cast %4 : i32 to index
    %8 = memref.load %arg2[%7] : memref<8xi32, #tpu.memory_space<smem>>
    %9 = arith.index_cast %4 : i32 to index
    %10 = memref.load %arg3[%9] : memref<8xi32, #tpu.memory_space<smem>>
    %11 = arith.index_cast %4 : i32 to index
    %12 = memref.load %arg4[%11] : memref<8xi32, #tpu.memory_space<smem>>
    %13 = arith.index_cast %4 : i32 to index
    %14 = memref.load %arg5[%13] : memref<8xi32, #tpu.memory_space<smem>>
    %c0_i32_3 = arith.constant 0 : i32
    %15 = arith.cmpi ne, %14, %c0_i32_3 : i32
    %c0_i32_4 = arith.constant 0 : i32
    %16 = arith.select %15, %c0_i32_4, %8 : i32
    %c0_i32_5 = arith.constant 0 : i32
    %17 = arith.cmpi ne, %14, %c0_i32_5 : i32
    %c0_i32_6 = arith.constant 0 : i32
    %18 = arith.select %17, %c0_i32_6, %10 : i32
    %19 = vector.extract_strided_slice %1 {offsets = [0, 0], sizes = [1, 128], strides = [1, 1]} : vector<8x128xi32> to vector<1x128xi32>
    %20 = vector.extract_strided_slice %2 {offsets = [0, 0], sizes = [1, 128], strides = [1, 1]} : vector<8x128xi32> to vector<1x128xi32>
    %21 = arith.subi %16, %18 : i32
    %c128_i32 = arith.constant 128 : i32
    %22 = arith.addi %21, %c128_i32 : i32
    %c128_i32_7 = arith.constant 128 : i32
    %c0_i32_8 = arith.constant 0 : i32
    %23 = arith.cmpi eq, %c128_i32_7, %c0_i32_8 : i32
    %c1_i32 = arith.constant 1 : i32
    %24 = arith.select %23, %c1_i32, %c128_i32_7 : i32
    %25 = arith.remsi %22, %24 : i32
    %c0_i32_9 = arith.constant 0 : i32
    %26 = arith.cmpi ne, %25, %c0_i32_9 : i32
    %c0_i32_10 = arith.constant 0 : i32
    %27 = arith.cmpi slt, %25, %c0_i32_10 : i32
    %c0_i32_11 = arith.constant 0 : i32
    %28 = arith.cmpi slt, %24, %c0_i32_11 : i32
    %29 = arith.xori %27, %28 : i1
    %30 = arith.andi %29, %26 : i1
    %31 = arith.addi %25, %24 : i32
    %32 = arith.select %30, %31, %25 : i32
    %33 = tpu.dynamic_rotate %19 by %32 dim 1 : vector<1x128xi32>, i32 -> vector<1x128xi32>
    %34 = tpu.dynamic_rotate %20 by %6 dim 1 : vector<1x128xi32>, i32 -> vector<1x128xi32>
    %35 = arith.subi %12, %18 : i32
    %36 = arith.addi %35, %16 : i32
    %37 = vector.broadcast %6 : i32 to vector<1x128xi32>
    %38 = arith.cmpi slt, %0, %37 : vector<1x128xi32>
    %39 = vector.broadcast %6 : i32 to vector<1x128xi32>
    %40 = arith.cmpi sge, %0, %39 : vector<1x128xi32>
    %41 = arith.addi %6, %16 : i32
    %42 = vector.broadcast %41 : i32 to vector<1x128xi32>
    %43 = arith.cmpi slt, %0, %42 : vector<1x128xi32>
    %44 = arith.andi %40, %43 : vector<1x128xi1>
    %45 = arith.select %44, %34, %33 : vector<1x128xi1>, vector<1x128xi32>
    %46 = arith.select %38, %19, %45 : vector<1x128xi1>, vector<1x128xi32>
    %47 = vector.broadcast %36 : i32 to vector<1x128xi32>
    %48 = arith.cmpi slt, %0, %47 : vector<1x128xi32>
    %c0_i32_12 = arith.constant 0 : i32
    %49 = vector.broadcast %c0_i32_12 : i32 to vector<1x128xi32>
    %50 = arith.select %48, %46, %49 : vector<1x128xi1>, vector<1x128xi32>
    %c8_i32_13 = arith.constant 8 : i32
    %51 = arith.muli %arg0, %c8_i32_13 : i32
    %c1_i32_14 = arith.constant 1 : i32
    %52 = arith.addi %51, %c1_i32_14 : i32
    %53 = arith.index_cast %52 : i32 to index
    %54 = memref.load %arg1[%53] : memref<8xi32, #tpu.memory_space<smem>>
    %55 = arith.index_cast %52 : i32 to index
    %56 = memref.load %arg2[%55] : memref<8xi32, #tpu.memory_space<smem>>
    %57 = arith.index_cast %52 : i32 to index
    %58 = memref.load %arg3[%57] : memref<8xi32, #tpu.memory_space<smem>>
    %59 = arith.index_cast %52 : i32 to index
    %60 = memref.load %arg4[%59] : memref<8xi32, #tpu.memory_space<smem>>
    %61 = arith.index_cast %52 : i32 to index
    %62 = memref.load %arg5[%61] : memref<8xi32, #tpu.memory_space<smem>>
    %c0_i32_15 = arith.constant 0 : i32
    %63 = arith.cmpi ne, %62, %c0_i32_15 : i32
    %c0_i32_16 = arith.constant 0 : i32
    %64 = arith.select %63, %c0_i32_16, %56 : i32
    %c0_i32_17 = arith.constant 0 : i32
    %65 = arith.cmpi ne, %62, %c0_i32_17 : i32
    %c0_i32_18 = arith.constant 0 : i32
    %66 = arith.select %65, %c0_i32_18, %58 : i32
    %67 = vector.extract_strided_slice %1 {offsets = [1, 0], sizes = [1, 128], strides = [1, 1]} : vector<8x128xi32> to vector<1x128xi32>
    %68 = vector.extract_strided_slice %2 {offsets = [1, 0], sizes = [1, 128], strides = [1, 1]} : vector<8x128xi32> to vector<1x128xi32>
    %69 = arith.subi %64, %66 : i32
    %c128_i32_19 = arith.constant 128 : i32
    %70 = arith.addi %69, %c128_i32_19 : i32
    %c128_i32_20 = arith.constant 128 : i32
    %c0_i32_21 = arith.constant 0 : i32
    %71 = arith.cmpi eq, %c128_i32_20, %c0_i32_21 : i32
    %c1_i32_22 = arith.constant 1 : i32
    %72 = arith.select %71, %c1_i32_22, %c128_i32_20 : i32
    %73 = arith.remsi %70, %72 : i32
    %c0_i32_23 = arith.constant 0 : i32
    %74 = arith.cmpi ne, %73, %c0_i32_23 : i32
    %c0_i32_24 = arith.constant 0 : i32
    %75 = arith.cmpi slt, %73, %c0_i32_24 : i32
    %c0_i32_25 = arith.constant 0 : i32
    %76 = arith.cmpi slt, %72, %c0_i32_25 : i32
    %77 = arith.xori %75, %76 : i1
    %78 = arith.andi %77, %74 : i1
    %79 = arith.addi %73, %72 : i32
    %80 = arith.select %78, %79, %73 : i32
    %81 = tpu.dynamic_rotate %67 by %80 dim 1 : vector<1x128xi32>, i32 -> vector<1x128xi32>
    %82 = tpu.dynamic_rotate %68 by %54 dim 1 : vector<1x128xi32>, i32 -> vector<1x128xi32>
    %83 = arith.subi %60, %66 : i32
    %84 = arith.addi %83, %64 : i32
    %85 = vector.broadcast %54 : i32 to vector<1x128xi32>
    %86 = arith.cmpi slt, %0, %85 : vector<1x128xi32>
    %87 = vector.broadcast %54 : i32 to vector<1x128xi32>
    %88 = arith.cmpi sge, %0, %87 : vector<1x128xi32>
    %89 = arith.addi %54, %64 : i32
    %90 = vector.broadcast %89 : i32 to vector<1x128xi32>
    %91 = arith.cmpi slt, %0, %90 : vector<1x128xi32>
    %92 = arith.andi %88, %91 : vector<1x128xi1>
    %93 = arith.select %92, %82, %81 : vector<1x128xi1>, vector<1x128xi32>
    %94 = arith.select %86, %67, %93 : vector<1x128xi1>, vector<1x128xi32>
    %95 = vector.broadcast %84 : i32 to vector<1x128xi32>
    %96 = arith.cmpi slt, %0, %95 : vector<1x128xi32>
    %c0_i32_26 = arith.constant 0 : i32
    %97 = vector.broadcast %c0_i32_26 : i32 to vector<1x128xi32>
    %98 = arith.select %96, %94, %97 : vector<1x128xi1>, vector<1x128xi32>
    %c8_i32_27 = arith.constant 8 : i32
    %99 = arith.muli %arg0, %c8_i32_27 : i32
    %c2_i32 = arith.constant 2 : i32
    %100 = arith.addi %99, %c2_i32 : i32
    %101 = arith.index_cast %100 : i32 to index
    %102 = memref.load %arg1[%101] : memref<8xi32, #tpu.memory_space<smem>>
    %103 = arith.index_cast %100 : i32 to index
    %104 = memref.load %arg2[%103] : memref<8xi32, #tpu.memory_space<smem>>
    %105 = arith.index_cast %100 : i32 to index
    %106 = memref.load %arg3[%105] : memref<8xi32, #tpu.memory_space<smem>>
    %107 = arith.index_cast %100 : i32 to index
    %108 = memref.load %arg4[%107] : memref<8xi32, #tpu.memory_space<smem>>
    %109 = arith.index_cast %100 : i32 to index
    %110 = memref.load %arg5[%109] : memref<8xi32, #tpu.memory_space<smem>>
    %c0_i32_28 = arith.constant 0 : i32
    %111 = arith.cmpi ne, %110, %c0_i32_28 : i32
    %c0_i32_29 = arith.constant 0 : i32
    %112 = arith.select %111, %c0_i32_29, %104 : i32
    %c0_i32_30 = arith.constant 0 : i32
    %113 = arith.cmpi ne, %110, %c0_i32_30 : i32
    %c0_i32_31 = arith.constant 0 : i32
    %114 = arith.select %113, %c0_i32_31, %106 : i32
    %115 = vector.extract_strided_slice %1 {offsets = [2, 0], sizes = [1, 128], strides = [1, 1]} : vector<8x128xi32> to vector<1x128xi32>
    %116 = vector.extract_strided_slice %2 {offsets = [2, 0], sizes = [1, 128], strides = [1, 1]} : vector<8x128xi32> to vector<1x128xi32>
    %117 = arith.subi %112, %114 : i32
    %c128_i32_32 = arith.constant 128 : i32
    %118 = arith.addi %117, %c128_i32_32 : i32
    %c128_i32_33 = arith.constant 128 : i32
    %c0_i32_34 = arith.constant 0 : i32
    %119 = arith.cmpi eq, %c128_i32_33, %c0_i32_34 : i32
    %c1_i32_35 = arith.constant 1 : i32
    %120 = arith.select %119, %c1_i32_35, %c128_i32_33 : i32
    %121 = arith.remsi %118, %120 : i32
    %c0_i32_36 = arith.constant 0 : i32
    %122 = arith.cmpi ne, %121, %c0_i32_36 : i32
    %c0_i32_37 = arith.constant 0 : i32
    %123 = arith.cmpi slt, %121, %c0_i32_37 : i32
    %c0_i32_38 = arith.constant 0 : i32
    %124 = arith.cmpi slt, %120, %c0_i32_38 : i32
    %125 = arith.xori %123, %124 : i1
    %126 = arith.andi %125, %122 : i1
    %127 = arith.addi %121, %120 : i32
    %128 = arith.select %126, %127, %121 : i32
    %129 = tpu.dynamic_rotate %115 by %128 dim 1 : vector<1x128xi32>, i32 -> vector<1x128xi32>
    %130 = tpu.dynamic_rotate %116 by %102 dim 1 : vector<1x128xi32>, i32 -> vector<1x128xi32>
    %131 = arith.subi %108, %114 : i32
    %132 = arith.addi %131, %112 : i32
    %133 = vector.broadcast %102 : i32 to vector<1x128xi32>
    %134 = arith.cmpi slt, %0, %133 : vector<1x128xi32>
    %135 = vector.broadcast %102 : i32 to vector<1x128xi32>
    %136 = arith.cmpi sge, %0, %135 : vector<1x128xi32>
    %137 = arith.addi %102, %112 : i32
    %138 = vector.broadcast %137 : i32 to vector<1x128xi32>
    %139 = arith.cmpi slt, %0, %138 : vector<1x128xi32>
    %140 = arith.andi %136, %139 : vector<1x128xi1>
    %141 = arith.select %140, %130, %129 : vector<1x128xi1>, vector<1x128xi32>
    %142 = arith.select %134, %115, %141 : vector<1x128xi1>, vector<1x128xi32>
    %143 = vector.broadcast %132 : i32 to vector<1x128xi32>
    %144 = arith.cmpi slt, %0, %143 : vector<1x128xi32>
    %c0_i32_39 = arith.constant 0 : i32
    %145 = vector.broadcast %c0_i32_39 : i32 to vector<1x128xi32>
    %146 = arith.select %144, %142, %145 : vector<1x128xi1>, vector<1x128xi32>
    %c8_i32_40 = arith.constant 8 : i32
    %147 = arith.muli %arg0, %c8_i32_40 : i32
    %c3_i32 = arith.constant 3 : i32
    %148 = arith.addi %147, %c3_i32 : i32
    %149 = arith.index_cast %148 : i32 to index
    %150 = memref.load %arg1[%149] : memref<8xi32, #tpu.memory_space<smem>>
    %151 = arith.index_cast %148 : i32 to index
    %152 = memref.load %arg2[%151] : memref<8xi32, #tpu.memory_space<smem>>
    %153 = arith.index_cast %148 : i32 to index
    %154 = memref.load %arg3[%153] : memref<8xi32, #tpu.memory_space<smem>>
    %155 = arith.index_cast %148 : i32 to index
    %156 = memref.load %arg4[%155] : memref<8xi32, #tpu.memory_space<smem>>
    %157 = arith.index_cast %148 : i32 to index
    %158 = memref.load %arg5[%157] : memref<8xi32, #tpu.memory_space<smem>>
    %c0_i32_41 = arith.constant 0 : i32
    %159 = arith.cmpi ne, %158, %c0_i32_41 : i32
    %c0_i32_42 = arith.constant 0 : i32
    %160 = arith.select %159, %c0_i32_42, %152 : i32
    %c0_i32_43 = arith.constant 0 : i32
    %161 = arith.cmpi ne, %158, %c0_i32_43 : i32
    %c0_i32_44 = arith.constant 0 : i32
    %162 = arith.select %161, %c0_i32_44, %154 : i32
    %163 = vector.extract_strided_slice %1 {offsets = [3, 0], sizes = [1, 128], strides = [1, 1]} : vector<8x128xi32> to vector<1x128xi32>
    %164 = vector.extract_strided_slice %2 {offsets = [3, 0], sizes = [1, 128], strides = [1, 1]} : vector<8x128xi32> to vector<1x128xi32>
    %165 = arith.subi %160, %162 : i32
    %c128_i32_45 = arith.constant 128 : i32
    %166 = arith.addi %165, %c128_i32_45 : i32
    %c128_i32_46 = arith.constant 128 : i32
    %c0_i32_47 = arith.constant 0 : i32
    %167 = arith.cmpi eq, %c128_i32_46, %c0_i32_47 : i32
    %c1_i32_48 = arith.constant 1 : i32
    %168 = arith.select %167, %c1_i32_48, %c128_i32_46 : i32
    %169 = arith.remsi %166, %168 : i32
    %c0_i32_49 = arith.constant 0 : i32
    %170 = arith.cmpi ne, %169, %c0_i32_49 : i32
    %c0_i32_50 = arith.constant 0 : i32
    %171 = arith.cmpi slt, %169, %c0_i32_50 : i32
    %c0_i32_51 = arith.constant 0 : i32
    %172 = arith.cmpi slt, %168, %c0_i32_51 : i32
    %173 = arith.xori %171, %172 : i1
    %174 = arith.andi %173, %170 : i1
    %175 = arith.addi %169, %168 : i32
    %176 = arith.select %174, %175, %169 : i32
    %177 = tpu.dynamic_rotate %163 by %176 dim 1 : vector<1x128xi32>, i32 -> vector<1x128xi32>
    %178 = tpu.dynamic_rotate %164 by %150 dim 1 : vector<1x128xi32>, i32 -> vector<1x128xi32>
    %179 = arith.subi %156, %162 : i32
    %180 = arith.addi %179, %160 : i32
    %181 = vector.broadcast %150 : i32 to vector<1x128xi32>
    %182 = arith.cmpi slt, %0, %181 : vector<1x128xi32>
    %183 = vector.broadcast %150 : i32 to vector<1x128xi32>
    %184 = arith.cmpi sge, %0, %183 : vector<1x128xi32>
    %185 = arith.addi %150, %160 : i32
    %186 = vector.broadcast %185 : i32 to vector<1x128xi32>
    %187 = arith.cmpi slt, %0, %186 : vector<1x128xi32>
    %188 = arith.andi %184, %187 : vector<1x128xi1>
    %189 = arith.select %188, %178, %177 : vector<1x128xi1>, vector<1x128xi32>
    %190 = arith.select %182, %163, %189 : vector<1x128xi1>, vector<1x128xi32>
    %191 = vector.broadcast %180 : i32 to vector<1x128xi32>
    %192 = arith.cmpi slt, %0, %191 : vector<1x128xi32>
    %c0_i32_52 = arith.constant 0 : i32
    %193 = vector.broadcast %c0_i32_52 : i32 to vector<1x128xi32>
    %194 = arith.select %192, %190, %193 : vector<1x128xi1>, vector<1x128xi32>
    %c8_i32_53 = arith.constant 8 : i32
    %195 = arith.muli %arg0, %c8_i32_53 : i32
    %c4_i32 = arith.constant 4 : i32
    %196 = arith.addi %195, %c4_i32 : i32
    %197 = arith.index_cast %196 : i32 to index
    %198 = memref.load %arg1[%197] : memref<8xi32, #tpu.memory_space<smem>>
    %199 = arith.index_cast %196 : i32 to index
    %200 = memref.load %arg2[%199] : memref<8xi32, #tpu.memory_space<smem>>
    %201 = arith.index_cast %196 : i32 to index
    %202 = memref.load %arg3[%201] : memref<8xi32, #tpu.memory_space<smem>>
    %203 = arith.index_cast %196 : i32 to index
    %204 = memref.load %arg4[%203] : memref<8xi32, #tpu.memory_space<smem>>
    %205 = arith.index_cast %196 : i32 to index
    %206 = memref.load %arg5[%205] : memref<8xi32, #tpu.memory_space<smem>>
    %c0_i32_54 = arith.constant 0 : i32
    %207 = arith.cmpi ne, %206, %c0_i32_54 : i32
    %c0_i32_55 = arith.constant 0 : i32
    %208 = arith.select %207, %c0_i32_55, %200 : i32
    %c0_i32_56 = arith.constant 0 : i32
    %209 = arith.cmpi ne, %206, %c0_i32_56 : i32
    %c0_i32_57 = arith.constant 0 : i32
    %210 = arith.select %209, %c0_i32_57, %202 : i32
    %211 = vector.extract_strided_slice %1 {offsets = [4, 0], sizes = [1, 128], strides = [1, 1]} : vector<8x128xi32> to vector<1x128xi32>
    %212 = vector.extract_strided_slice %2 {offsets = [4, 0], sizes = [1, 128], strides = [1, 1]} : vector<8x128xi32> to vector<1x128xi32>
    %213 = arith.subi %208, %210 : i32
    %c128_i32_58 = arith.constant 128 : i32
    %214 = arith.addi %213, %c128_i32_58 : i32
    %c128_i32_59 = arith.constant 128 : i32
    %c0_i32_60 = arith.constant 0 : i32
    %215 = arith.cmpi eq, %c128_i32_59, %c0_i32_60 : i32
    %c1_i32_61 = arith.constant 1 : i32
    %216 = arith.select %215, %c1_i32_61, %c128_i32_59 : i32
    %217 = arith.remsi %214, %216 : i32
    %c0_i32_62 = arith.constant 0 : i32
    %218 = arith.cmpi ne, %217, %c0_i32_62 : i32
    %c0_i32_63 = arith.constant 0 : i32
    %219 = arith.cmpi slt, %217, %c0_i32_63 : i32
    %c0_i32_64 = arith.constant 0 : i32
    %220 = arith.cmpi slt, %216, %c0_i32_64 : i32
    %221 = arith.xori %219, %220 : i1
    %222 = arith.andi %221, %218 : i1
    %223 = arith.addi %217, %216 : i32
    %224 = arith.select %222, %223, %217 : i32
    %225 = tpu.dynamic_rotate %211 by %224 dim 1 : vector<1x128xi32>, i32 -> vector<1x128xi32>
    %226 = tpu.dynamic_rotate %212 by %198 dim 1 : vector<1x128xi32>, i32 -> vector<1x128xi32>
    %227 = arith.subi %204, %210 : i32
    %228 = arith.addi %227, %208 : i32
    %229 = vector.broadcast %198 : i32 to vector<1x128xi32>
    %230 = arith.cmpi slt, %0, %229 : vector<1x128xi32>
    %231 = vector.broadcast %198 : i32 to vector<1x128xi32>
    %232 = arith.cmpi sge, %0, %231 : vector<1x128xi32>
    %233 = arith.addi %198, %208 : i32
    %234 = vector.broadcast %233 : i32 to vector<1x128xi32>
    %235 = arith.cmpi slt, %0, %234 : vector<1x128xi32>
    %236 = arith.andi %232, %235 : vector<1x128xi1>
    %237 = arith.select %236, %226, %225 : vector<1x128xi1>, vector<1x128xi32>
    %238 = arith.select %230, %211, %237 : vector<1x128xi1>, vector<1x128xi32>
    %239 = vector.broadcast %228 : i32 to vector<1x128xi32>
    %240 = arith.cmpi slt, %0, %239 : vector<1x128xi32>
    %c0_i32_65 = arith.constant 0 : i32
    %241 = vector.broadcast %c0_i32_65 : i32 to vector<1x128xi32>
    %242 = arith.select %240, %238, %241 : vector<1x128xi1>, vector<1x128xi32>
    %c8_i32_66 = arith.constant 8 : i32
    %243 = arith.muli %arg0, %c8_i32_66 : i32
    %c5_i32 = arith.constant 5 : i32
    %244 = arith.addi %243, %c5_i32 : i32
    %245 = arith.index_cast %244 : i32 to index
    %246 = memref.load %arg1[%245] : memref<8xi32, #tpu.memory_space<smem>>
    %247 = arith.index_cast %244 : i32 to index
    %248 = memref.load %arg2[%247] : memref<8xi32, #tpu.memory_space<smem>>
    %249 = arith.index_cast %244 : i32 to index
    %250 = memref.load %arg3[%249] : memref<8xi32, #tpu.memory_space<smem>>
    %251 = arith.index_cast %244 : i32 to index
    %252 = memref.load %arg4[%251] : memref<8xi32, #tpu.memory_space<smem>>
    %253 = arith.index_cast %244 : i32 to index
    %254 = memref.load %arg5[%253] : memref<8xi32, #tpu.memory_space<smem>>
    %c0_i32_67 = arith.constant 0 : i32
    %255 = arith.cmpi ne, %254, %c0_i32_67 : i32
    %c0_i32_68 = arith.constant 0 : i32
    %256 = arith.select %255, %c0_i32_68, %248 : i32
    %c0_i32_69 = arith.constant 0 : i32
    %257 = arith.cmpi ne, %254, %c0_i32_69 : i32
    %c0_i32_70 = arith.constant 0 : i32
    %258 = arith.select %257, %c0_i32_70, %250 : i32
    %259 = vector.extract_strided_slice %1 {offsets = [5, 0], sizes = [1, 128], strides = [1, 1]} : vector<8x128xi32> to vector<1x128xi32>
    %260 = vector.extract_strided_slice %2 {offsets = [5, 0], sizes = [1, 128], strides = [1, 1]} : vector<8x128xi32> to vector<1x128xi32>
    %261 = arith.subi %256, %258 : i32
    %c128_i32_71 = arith.constant 128 : i32
    %262 = arith.addi %261, %c128_i32_71 : i32
    %c128_i32_72 = arith.constant 128 : i32
    %c0_i32_73 = arith.constant 0 : i32
    %263 = arith.cmpi eq, %c128_i32_72, %c0_i32_73 : i32
    %c1_i32_74 = arith.constant 1 : i32
    %264 = arith.select %263, %c1_i32_74, %c128_i32_72 : i32
    %265 = arith.remsi %262, %264 : i32
    %c0_i32_75 = arith.constant 0 : i32
    %266 = arith.cmpi ne, %265, %c0_i32_75 : i32
    %c0_i32_76 = arith.constant 0 : i32
    %267 = arith.cmpi slt, %265, %c0_i32_76 : i32
    %c0_i32_77 = arith.constant 0 : i32
    %268 = arith.cmpi slt, %264, %c0_i32_77 : i32
    %269 = arith.xori %267, %268 : i1
    %270 = arith.andi %269, %266 : i1
    %271 = arith.addi %265, %264 : i32
    %272 = arith.select %270, %271, %265 : i32
    %273 = tpu.dynamic_rotate %259 by %272 dim 1 : vector<1x128xi32>, i32 -> vector<1x128xi32>
    %274 = tpu.dynamic_rotate %260 by %246 dim 1 : vector<1x128xi32>, i32 -> vector<1x128xi32>
    %275 = arith.subi %252, %258 : i32
    %276 = arith.addi %275, %256 : i32
    %277 = vector.broadcast %246 : i32 to vector<1x128xi32>
    %278 = arith.cmpi slt, %0, %277 : vector<1x128xi32>
    %279 = vector.broadcast %246 : i32 to vector<1x128xi32>
    %280 = arith.cmpi sge, %0, %279 : vector<1x128xi32>
    %281 = arith.addi %246, %256 : i32
    %282 = vector.broadcast %281 : i32 to vector<1x128xi32>
    %283 = arith.cmpi slt, %0, %282 : vector<1x128xi32>
    %284 = arith.andi %280, %283 : vector<1x128xi1>
    %285 = arith.select %284, %274, %273 : vector<1x128xi1>, vector<1x128xi32>
    %286 = arith.select %278, %259, %285 : vector<1x128xi1>, vector<1x128xi32>
    %287 = vector.broadcast %276 : i32 to vector<1x128xi32>
    %288 = arith.cmpi slt, %0, %287 : vector<1x128xi32>
    %c0_i32_78 = arith.constant 0 : i32
    %289 = vector.broadcast %c0_i32_78 : i32 to vector<1x128xi32>
    %290 = arith.select %288, %286, %289 : vector<1x128xi1>, vector<1x128xi32>
    %c8_i32_79 = arith.constant 8 : i32
    %291 = arith.muli %arg0, %c8_i32_79 : i32
    %c6_i32 = arith.constant 6 : i32
    %292 = arith.addi %291, %c6_i32 : i32
    %293 = arith.index_cast %292 : i32 to index
    %294 = memref.load %arg1[%293] : memref<8xi32, #tpu.memory_space<smem>>
    %295 = arith.index_cast %292 : i32 to index
    %296 = memref.load %arg2[%295] : memref<8xi32, #tpu.memory_space<smem>>
    %297 = arith.index_cast %292 : i32 to index
    %298 = memref.load %arg3[%297] : memref<8xi32, #tpu.memory_space<smem>>
    %299 = arith.index_cast %292 : i32 to index
    %300 = memref.load %arg4[%299] : memref<8xi32, #tpu.memory_space<smem>>
    %301 = arith.index_cast %292 : i32 to index
    %302 = memref.load %arg5[%301] : memref<8xi32, #tpu.memory_space<smem>>
    %c0_i32_80 = arith.constant 0 : i32
    %303 = arith.cmpi ne, %302, %c0_i32_80 : i32
    %c0_i32_81 = arith.constant 0 : i32
    %304 = arith.select %303, %c0_i32_81, %296 : i32
    %c0_i32_82 = arith.constant 0 : i32
    %305 = arith.cmpi ne, %302, %c0_i32_82 : i32
    %c0_i32_83 = arith.constant 0 : i32
    %306 = arith.select %305, %c0_i32_83, %298 : i32
    %307 = vector.extract_strided_slice %1 {offsets = [6, 0], sizes = [1, 128], strides = [1, 1]} : vector<8x128xi32> to vector<1x128xi32>
    %308 = vector.extract_strided_slice %2 {offsets = [6, 0], sizes = [1, 128], strides = [1, 1]} : vector<8x128xi32> to vector<1x128xi32>
    %309 = arith.subi %304, %306 : i32
    %c128_i32_84 = arith.constant 128 : i32
    %310 = arith.addi %309, %c128_i32_84 : i32
    %c128_i32_85 = arith.constant 128 : i32
    %c0_i32_86 = arith.constant 0 : i32
    %311 = arith.cmpi eq, %c128_i32_85, %c0_i32_86 : i32
    %c1_i32_87 = arith.constant 1 : i32
    %312 = arith.select %311, %c1_i32_87, %c128_i32_85 : i32
    %313 = arith.remsi %310, %312 : i32
    %c0_i32_88 = arith.constant 0 : i32
    %314 = arith.cmpi ne, %313, %c0_i32_88 : i32
    %c0_i32_89 = arith.constant 0 : i32
    %315 = arith.cmpi slt, %313, %c0_i32_89 : i32
    %c0_i32_90 = arith.constant 0 : i32
    %316 = arith.cmpi slt, %312, %c0_i32_90 : i32
    %317 = arith.xori %315, %316 : i1
    %318 = arith.andi %317, %314 : i1
    %319 = arith.addi %313, %312 : i32
    %320 = arith.select %318, %319, %313 : i32
    %321 = tpu.dynamic_rotate %307 by %320 dim 1 : vector<1x128xi32>, i32 -> vector<1x128xi32>
    %322 = tpu.dynamic_rotate %308 by %294 dim 1 : vector<1x128xi32>, i32 -> vector<1x128xi32>
    %323 = arith.subi %300, %306 : i32
    %324 = arith.addi %323, %304 : i32
    %325 = vector.broadcast %294 : i32 to vector<1x128xi32>
    %326 = arith.cmpi slt, %0, %325 : vector<1x128xi32>
    %327 = vector.broadcast %294 : i32 to vector<1x128xi32>
    %328 = arith.cmpi sge, %0, %327 : vector<1x128xi32>
    %329 = arith.addi %294, %304 : i32
    %330 = vector.broadcast %329 : i32 to vector<1x128xi32>
    %331 = arith.cmpi slt, %0, %330 : vector<1x128xi32>
    %332 = arith.andi %328, %331 : vector<1x128xi1>
    %333 = arith.select %332, %322, %321 : vector<1x128xi1>, vector<1x128xi32>
    %334 = arith.select %326, %307, %333 : vector<1x128xi1>, vector<1x128xi32>
    %335 = vector.broadcast %324 : i32 to vector<1x128xi32>
    %336 = arith.cmpi slt, %0, %335 : vector<1x128xi32>
    %c0_i32_91 = arith.constant 0 : i32
    %337 = vector.broadcast %c0_i32_91 : i32 to vector<1x128xi32>
    %338 = arith.select %336, %334, %337 : vector<1x128xi1>, vector<1x128xi32>
    %c8_i32_92 = arith.constant 8 : i32
    %339 = arith.muli %arg0, %c8_i32_92 : i32
    %c7_i32 = arith.constant 7 : i32
    %340 = arith.addi %339, %c7_i32 : i32
    %341 = arith.index_cast %340 : i32 to index
    %342 = memref.load %arg1[%341] : memref<8xi32, #tpu.memory_space<smem>>
    %343 = arith.index_cast %340 : i32 to index
    %344 = memref.load %arg2[%343] : memref<8xi32, #tpu.memory_space<smem>>
    %345 = arith.index_cast %340 : i32 to index
    %346 = memref.load %arg3[%345] : memref<8xi32, #tpu.memory_space<smem>>
    %347 = arith.index_cast %340 : i32 to index
    %348 = memref.load %arg4[%347] : memref<8xi32, #tpu.memory_space<smem>>
    %349 = arith.index_cast %340 : i32 to index
    %350 = memref.load %arg5[%349] : memref<8xi32, #tpu.memory_space<smem>>
    %c0_i32_93 = arith.constant 0 : i32
    %351 = arith.cmpi ne, %350, %c0_i32_93 : i32
    %c0_i32_94 = arith.constant 0 : i32
    %352 = arith.select %351, %c0_i32_94, %344 : i32
    %c0_i32_95 = arith.constant 0 : i32
    %353 = arith.cmpi ne, %350, %c0_i32_95 : i32
    %c0_i32_96 = arith.constant 0 : i32
    %354 = arith.select %353, %c0_i32_96, %346 : i32
    %355 = vector.extract_strided_slice %1 {offsets = [7, 0], sizes = [1, 128], strides = [1, 1]} : vector<8x128xi32> to vector<1x128xi32>
    %356 = vector.extract_strided_slice %2 {offsets = [7, 0], sizes = [1, 128], strides = [1, 1]} : vector<8x128xi32> to vector<1x128xi32>
    %357 = arith.subi %352, %354 : i32
    %c128_i32_97 = arith.constant 128 : i32
    %358 = arith.addi %357, %c128_i32_97 : i32
    %c128_i32_98 = arith.constant 128 : i32
    %c0_i32_99 = arith.constant 0 : i32
    %359 = arith.cmpi eq, %c128_i32_98, %c0_i32_99 : i32
    %c1_i32_100 = arith.constant 1 : i32
    %360 = arith.select %359, %c1_i32_100, %c128_i32_98 : i32
    %361 = arith.remsi %358, %360 : i32
    %c0_i32_101 = arith.constant 0 : i32
    %362 = arith.cmpi ne, %361, %c0_i32_101 : i32
    %c0_i32_102 = arith.constant 0 : i32
    %363 = arith.cmpi slt, %361, %c0_i32_102 : i32
    %c0_i32_103 = arith.constant 0 : i32
    %364 = arith.cmpi slt, %360, %c0_i32_103 : i32
    %365 = arith.xori %363, %364 : i1
    %366 = arith.andi %365, %362 : i1
    %367 = arith.addi %361, %360 : i32
    %368 = arith.select %366, %367, %361 : i32
    %369 = tpu.dynamic_rotate %355 by %368 dim 1 : vector<1x128xi32>, i32 -> vector<1x128xi32>
    %370 = tpu.dynamic_rotate %356 by %342 dim 1 : vector<1x128xi32>, i32 -> vector<1x128xi32>
    %371 = arith.subi %348, %354 : i32
    %372 = arith.addi %371, %352 : i32
    %373 = vector.broadcast %342 : i32 to vector<1x128xi32>
    %374 = arith.cmpi slt, %0, %373 : vector<1x128xi32>
    %375 = vector.broadcast %342 : i32 to vector<1x128xi32>
    %376 = arith.cmpi sge, %0, %375 : vector<1x128xi32>
    %377 = arith.addi %342, %352 : i32
    %378 = vector.broadcast %377 : i32 to vector<1x128xi32>
    %379 = arith.cmpi slt, %0, %378 : vector<1x128xi32>
    %380 = arith.andi %376, %379 : vector<1x128xi1>
    %381 = arith.select %380, %370, %369 : vector<1x128xi1>, vector<1x128xi32>
    %382 = arith.select %374, %355, %381 : vector<1x128xi1>, vector<1x128xi32>
    %383 = vector.broadcast %372 : i32 to vector<1x128xi32>
    %384 = arith.cmpi slt, %0, %383 : vector<1x128xi32>
    %c0_i32_104 = arith.constant 0 : i32
    %385 = vector.broadcast %c0_i32_104 : i32 to vector<1x128xi32>
    %386 = arith.select %384, %382, %385 : vector<1x128xi1>, vector<1x128xi32>
    %387 = tpu.concatenate %50, %98, %146, %194, %242, %290, %338, %386 in 0 : vector<1x128xi32>, vector<1x128xi32>, vector<1x128xi32>, vector<1x128xi32>, vector<1x128xi32>, vector<1x128xi32>, vector<1x128xi32>, vector<1x128xi32> -> vector<8x128xi32>
    %c0_105 = arith.constant 0 : index
    %c0_106 = arith.constant 0 : index
    %388 = vector.load %arg8[%c0_105, %c0_106] : memref<8x128xi32, #tpu.memory_space<vmem>>, vector<8x128xi32>
    tpu.vector_store %arg8[%c0_105, %c0_106], %387 {strides = array<i32>} : memref<8x128xi32, #tpu.memory_space<vmem>>, vector<8x128xi32>,
    return
  }
  func.func @transform_0(%arg0: i32) -> i32 {
    %c0_i32 = arith.constant 0 : i32
    %c0_i32_0 = arith.constant 0 : i32
    return %c0_i32 : i32
  }
  func.func @transform_1(%arg0: i32) -> i32 {
    %c0_i32 = arith.constant 0 : i32
    %c0_i32_0 = arith.constant 0 : i32
    return %c0_i32 : i32
  }
  func.func @transform_2(%arg0: i32) -> i32 {
    %c0_i32 = arith.constant 0 : i32
    %c0_i32_0 = arith.constant 0 : i32
    return %c0_i32 : i32
  }
  func.func @transform_3(%arg0: i32) -> i32 {
    %c0_i32 = arith.constant 0 : i32
    %c0_i32_0 = arith.constant 0 : i32
    return %c0_i32 : i32
  }
  func.func @transform_4(%arg0: i32) -> i32 {
    %c0_i32 = arith.constant 0 : i32
    %c0_i32_0 = arith.constant 0 : i32
    return %c0_i32 : i32
  }
  func.func @transform_5(%arg0: i32) -> (i32, i32) {
    %c0_i32 = arith.constant 0 : i32
    %c0_i32_0 = arith.constant 0 : i32
    return %arg0, %c0_i32 : i32, i32
  }
  func.func @transform_6(%arg0: i32) -> (i32, i32) {
    %c0_i32 = arith.constant 0 : i32
    %c0_i32_0 = arith.constant 0 : i32
    return %arg0, %c0_i32 : i32, i32
  }
  func.func @transform_7(%arg0: i32) -> (i32, i32) {
    %c0_i32 = arith.constant 0 : i32
    %c0_i32_0 = arith.constant 0 : i32
    return %arg0, %c0_i32 : i32, i32
  }
}

</mosaic_0001>

<bundles_post_ra>
// kernel: tpu_custom_call.1
= control target key start
LH: loop header
LB: loop body
LE: loop exit
PB: predicated region body
PF: predicated region fallthrough
CT: control target
= control target key end

     0   :  { %s1107_s0 = inlined_call_operand.hbm [shape: s32[8], index: 0, kind: input, shape index: {}]   ;;  %s1108_s1 = inlined_call_operand.hbm [shape: s32[8], index: 1, kind: input, shape index: {}]   ;;  %s1109_s2 = inlined_call_operand.vmem [shape: s32[8], index: 2, kind: input, shape index: {}]   ;;  %s1110_s3 = inlined_call_operand.vmem [shape: s32[8], index: 3, kind: input, shape index: {}]   ;;  %s1111_s4 = inlined_call_operand.vmem [shape: s32[8], index: 4, kind: input, shape index: {}]   ;;  %s1112_s5 = inlined_call_operand.hbm [shape: s32[8,128], index: 5, kind: input, shape index: {}]   ;;  %s1113_s6 = inlined_call_operand.hbm [shape: s32[8,128], index: 6, kind: input, shape index: {}]   ;;  %s1114_s7 = inlined_call_operand.hbm [shape: s32[8,128], index: 7, kind: output, shape index: {}]  }
   0x1   :  { %1125 = sst [smem:[#allocation30_spill]] %s1114_s7 }
   0x2   :  { %12 = vsyncpa [#allocation5], 0 }
   0x3   :  { %13 = vsyncpa [#allocation8], 0 }
   0x4   :  { %14 = vsyncpa [#allocation6], 0 }
   0x5   :  { %15 = vsyncpa [#allocation11], 0 }
   0x6   :  { %16 = vsyncpa [#allocation3], 0 }
   0x7   :  { %17 = vsyncpa [#allocation15], 0  ;;  %s51_s26 = sshll.u32 %s1110_s3, 4  ;;  %s52_s26 = int_to_ptr.vmem [resolvable:$true] %s51_s26 }
   0x8   :  { %18 = vsyncpa [#allocation4], 0  ;;  %s24_s29 = sshll.u32 %s1107_s0, 4  ;;  %s750_s30 = smov [#allocation10]   ;;  %s25_s29 = int_to_ptr.hbm [resolvable:$true] %s24_s29 }
   0x9   :  { %54 = dma.vmem_to_smem %s52_s26, 16, %s750_s30, [#allocation11]  }
   0xa   :  { %s751_s8 = smov [#allocation2]   ;;  %s33_s11 = sshll.u32 %s1108_s1, 4  ;;  %s34_s11 = int_to_ptr.hbm [resolvable:$true] %s33_s11 }
   0xb   :  { %27 = dma.hbm_to_smem %s25_s29, 16, %s751_s8, [#allocation5]  }
   0xc   :  { %s42_s3 = sshll.u32 %s1109_s2, 4  ;;  %s752_s14 = smov [#allocation7]   ;;  %s43_s3 = int_to_ptr.vmem [resolvable:$true] %s42_s3 }
   0xd   :  { %36 = dma.hbm_to_smem %s34_s11, 16, %s752_s14, [#allocation8]  }
   0xe   :  { %s753_s15 = smov [#allocation9]   ;;  %s60_s17 = sshll.u32 %s1111_s4, 4  ;;  %s61_s17 = int_to_ptr.vmem [resolvable:$true] %s60_s17 }
   0xf   :  { %45 = dma.vmem_to_smem %s43_s3, 16, %s753_s15, [#allocation6]  }
  0x10   :  { %s69_s20 = sshll.u32 %s1112_s5, 4  ;;  %s754_s1 = smov [#allocation12]   ;;  %s70_s20 = int_to_ptr.hbm [resolvable:$true] %s69_s20 }
  0x11   :  { %63 = dma.vmem_to_smem %s61_s17, 16, %s754_s1, [#allocation11]  }
  0x12   :  { %s755_s21 = smov [#allocation13]   ;;  %s80_s24 = sshll.u32 %s1113_s6, 4  ;;  %s81_s24 = int_to_ptr.hbm [resolvable:$true] %s80_s24 }
  0x13   :  { %s71_s22 = sshll.u32 %s755_s21, 4  ;;  %s756_s25 = smov [#allocation14]   ;;  %s72_s22 = int_to_ptr.vmem [resolvable:$true] %s71_s22 }
  0x14   :  { %74 = dma.hbm_to_vmem [thread:$0]  %s70_s20, 128, %s72_s22, [#allocation3]  }
  0x15   :  { %s82_s26 = sshll.u32 %s756_s25, 4  ;;  %s83_s26 = int_to_ptr.vmem [resolvable:$true] %s82_s26 }
  0x16   :  { %85 = dma.hbm_to_vmem [thread:$0]  %s81_s24, 128, %s83_s26, [#allocation15]  }
  0x17   :  { %736 = dma.done.wait [#allocation5], 16  }
  0x18   :  { %737 = vsyncadd [#allocation5], 4294967280 }
  0x19   :  { %738 = dma.done.wait [#allocation8], 16  }
  0x1a   :  { %739 = vsyncadd [#allocation8], 4294967280 }
  0x1b   :  { %740 = dma.done.wait [#allocation6], 16  }
  0x1c   :  { %741 = vsyncadd [#allocation6], 4294967280 }
  0x1d   :  { %742 = dma.done.wait [#allocation11], 32  }
  0x1e   :  { %743 = vsyncadd [#allocation11], 4294967264 }
  0x1f   :  { %744 = dma.done.wait [#allocation3], 128  }
  0x20   :  { %745 = vsyncadd [#allocation3], 4294967168 }
  0x21   :  { %746 = dma.done.wait [#allocation15], 128  }
  0x22   :  { %747 = vsyncadd [#allocation15], 4294967168 }
  0x23   :  { %114 = sfence }
  0x24   :  { %v819_v0 = vld [vmem:[#allocation14] sm:$0xff]  ;;  %s821_s4 = sld [smem:[#allocation2 + $0x2]]  ;;  %v856_v4 = vld [vmem:[#allocation13] sm:$0xff]  ;;  %v115_v16 = vlaneseq }
  0x25   :  { %s823_s5 = sld [smem:[#allocation2 + $0x1]]  ;;  %v240_v1 = vrot.slane %v819_v0, 2  ;;  %v192_v2 = vrot.slane %v819_v0, 1  ;;  %v288_v3 = vrot.slane %v819_v0, 3  ;;  %v235_v5 = vrot.slane %v856_v4, 2 }
  0x26   :  { %s826_s6 = sld [smem:[#allocation2 + $0x3]]  ;;  %v187_v6 = vrot.slane %v856_v4, 1  ;;  %v283_v7 = vrot.slane %v856_v4, 3  ;;  %v336_v8 = vrot.slane %v819_v0, 4  ;;  %v379_v9 = vrot.slane %v856_v4, 5 }
  0x27   :  { %s549_s27 = sld [smem:[#allocation7 + $0x2]]  ;;  %v432_v10 = vrot.slane %v819_v0, 6  ;;  %v427_v11 = vrot.slane %v856_v4, 6  ;;  %v480_v12 = vrot.slane %v819_v0, 7  ;;  %v331_v13 = vrot.slane %v856_v4, 4 }
  0x28   :  { %s552_s28 = sld [smem:[#allocation12 + $0x2]]  ;;  %v384_v14 = vrot.slane %v819_v0, 5  ;;  %v475_v15 = vrot.slane %v856_v4, 7  ;;  %v968_v18 = vand.u32 127, %v115_v16 }
  0x29   :  { %s550_s30 = sld [smem:[#allocation9 + $0x2]] }
  0x2a   :  { %s241_s29 = sand.u32 127, %s821_s4   ;;  %s541_s9 = sld [smem:[#allocation7 + $0x1]]  ;;  %v247_v33 = vstv %s821_s4 }
  0x2b   :  { %243 = vrot.lane.b32.xlu1 %v240_v1, %s241_s29  ;;  %s193_s8 = sand.u32 127, %s823_s5   ;;  %s831_s10 = sld [smem:[#allocation12 + $0x1]]  ;;  %v199_v31 = vstv %s823_s5  ;;  %vm249_vm7 = vcmp.ge.s32.totalorder %v968_v18, %v247_v33  ;;  %vm1030_vm15 = vcmp.lt.s32.totalorder %v968_v18, %v247_v33 }
  0x2c   :  { %195 = vrot.lane.b32.xlu0 %v192_v2, %s193_s8  ;;  %s542_s11 = sld [smem:[#allocation9 + $0x1]]  ;;  %s289_s13 = sand.u32 127, %s826_s6   ;;  %vm201_vm5 = vcmp.ge.s32.totalorder %v968_v18, %v199_v31  ;;  %v295_v35 = vstv %s826_s6  ;;  %vm1019_vm14 = vcmp.lt.s32.totalorder %v968_v18, %v199_v31 }
  0x2d   :  { %s834_s12 = sld [smem:[#allocation7 + $0x3]]  ;;  %vm297_vm10 = vcmp.ge.s32.totalorder %v968_v18, %v295_v35 }
  0x2e   :  { %p218_p0 = scmp.ne.s32.totalorder %s552_s28, 0  ;;  %s837_s3 = sld [smem:[#allocation2]] }
  0x2f   :  { %s843_s14 = sld [smem:[#allocation9 + $0x3]] }
  0x30   :  { %s1156_s27 = smov (%p218_p0, %s549_s27), 0  ;;  %s1158_s30 = smov (%p218_p0, %s550_s30), 0 }
  0x31   :  { %s221_s15 = ssub.s32 %s1156_s27, %s1158_s30  ;;  %s847_s0 = sld [smem:[#allocation12 + $0x3]] }
  0x32   :  { %s222_s16 = sadd.s32 128, %s221_s15  ;;  %p170_p1 = scmp.ne.s32.totalorder %s831_s10, 0 }
  0x33   :  { %291 = vrot.lane.b32.xlu1 %v288_v3, %s289_s13  ;;  %p223_p2 = scmp.lt.s32.totalorder %s222_s16, 0  ;;  %s224_s17 = ssub.s32 0, %s222_s16 }
  0x34   :  { %s553_s18 = smin.u32 %s224_s17, %s222_s16  ;;  %s146_s19 = sand.u32 127, %s837_s3   ;;  %v152_v21 = vstv %s837_s3 }
  0x35   :  { %s226_s20 = sand.u32 127, %s553_s18   ;;  %148 = vrot.lane.b32.xlu2 %v819_v0, %s146_s19  ;;  %s852_s1 = sld [smem:[#allocation7 + $0x5]]  ;;  %vm154_vm0 = vcmp.ge.s32.totalorder %v968_v18, %v152_v21  ;;  %vm153_vm3 = vcmp.lt.s32.totalorder %v968_v18, %v152_v21 }
  0x36   :  { %s227_s21 = ssub.s32 0, %s226_s20  ;;  %s854_s22 = sld [smem:[#allocation12 + $0x5]] }
  0x37   :  { %s1160_s21 = smov (!%p223_p2, %s227_s21), %s226_s20  ;;  %s1162_s9 = smov (%p170_p1, %s541_s9), 0 }
  0x38   :  { %p555_p3 = scmp.lt.s32.totalorder %s1160_s21, 0  ;;  %s233_s2 = sadd.s32 128, %s1160_s21 }
  0x39   :  { %s1164_s11 = smov (%p170_p1, %s542_s11), 0  ;;  %p266_p4 = scmp.ne.s32.totalorder %s847_s0, 0 }
  0x3a   :  { %s1166_s2 = smov (!%p555_p3, %s233_s2), %s1160_s21  ;;  %s173_s23 = ssub.s32 %s1162_s9, %s1164_s11 }
  0x3b   :  { %s236_s24 = sand.u32 127, %s1166_s2   ;;  %s174_s25 = sadd.s32 128, %s173_s23 }
  0x3c   :  { %238 = vrot.lane.b32.xlu1 %v235_v5, %s236_s24  ;;  %p175_p5 = scmp.lt.s32.totalorder %s174_s25, 0  ;;  %s176_s26 = ssub.s32 0, %s174_s25 }
  0x3d   :  { %s545_s28 = smin.u32 %s176_s26, %s174_s25  ;;  %s870_s29 = sld [smem:[#allocation2 + $0x4]] }
  0x3e   :  { %s178_s8 = sand.u32 127, %s545_s28   ;;  %s574_s10 = sld [smem:[#allocation9 + $0x5]] }
  0x3f   :  { %s179_s13 = ssub.s32 0, %s178_s8  ;;  %p362_p6 = scmp.ne.s32.totalorder %s854_s22, 0 }
  0x40   :  { %s1168_s13 = smov (!%p175_p5, %s179_s13), %s178_s8  ;;  %s1170_s12 = smov (%p266_p4, %s834_s12), 0 }
  0x41   :  { %p547_p7 = scmp.lt.s32.totalorder %s1168_s13, 0  ;;  %s185_s15 = sadd.s32 128, %s1168_s13 }
  0x42   :  { %s1172_s14 = smov (%p266_p4, %s843_s14), 0  ;;  %s121_s2 = sld [smem:[#allocation7]] }
  0x43   :  { %1126 = sst [smem:[#allocation24_spill]] %s870_s29  ;;  %s1174_s15 = smov (!%p547_p7, %s185_s15), %s1168_s13 }
  0x44   :  { %1127 = sst [smem:[#allocation25_spill]] %s1172_s14  ;;  %s269_s16 = ssub.s32 %s1170_s12, %s1172_s14 }
  0x45   :  { %s337_s17 = sand.u32 127, %s870_s29   ;;  %s188_s18 = sand.u32 127, %s1174_s15  }
  0x46   :  { %s270_s19 = sadd.s32 128, %s269_s16  ;;  %190 = vrot.lane.b32.xlu0 %v187_v6, %s188_s18  ;;  %s122_s24 = sld [smem:[#allocation9]] }
  0x47   :  { %p271_p8 = scmp.lt.s32.totalorder %s270_s19, 0  ;;  %s272_s20 = ssub.s32 0, %s270_s19 }
  0x48   :  { %s561_s21 = smin.u32 %s272_s20, %s270_s19  ;;  %s124_s0 = sld [smem:[#allocation12]] }
  0x49   :  { %s274_s23 = sand.u32 127, %s561_s21   ;;  %s1178_s1 = smov (%p362_p6, %s852_s1), 0 }
  0x4a   :  { %s275_s25 = ssub.s32 0, %s274_s23  ;;  %1128 = sst [smem:[#allocation26_spill]] %s1178_s1 }
  0x4b   :  { %s1176_s25 = smov (!%p271_p8, %s275_s25), %s274_s23  ;;  %s1180_s10 = smov (%p362_p6, %s574_s10), 0 }
  0x4c   :  { %p563_p9 = scmp.lt.s32.totalorder %s1176_s25, 0  ;;  %s281_s26 = sadd.s32 128, %s1176_s25 }
  0x4d   :  { %1129 = sst [smem:[#allocation27_spill]] %s1180_s10  ;;  %s365_s28 = ssub.s32 %s1178_s1, %s1180_s10 }
  0x4e   :  { %s1182_s26 = smov (!%p563_p9, %s281_s26), %s1176_s25  ;;  %s899_s8 = sld [smem:[#allocation2 + $0x6]] }
  0x4f   :  { %s284_s13 = sand.u32 127, %s1182_s26   ;;  %s366_s15 = sadd.s32 128, %s365_s28 }
  0x50   :  { %286 = vrot.lane.b32.xlu0 %v283_v7, %s284_s13  ;;  %p367_p10 = scmp.lt.s32.totalorder %s366_s15, 0  ;;  %s368_s16 = ssub.s32 0, %s366_s15 }
  0x51   :  { %s577_s18 = smin.u32 %s368_s16, %s366_s15  ;;  %p125_p11 = scmp.ne.s32.totalorder %s124_s0, 0 }
  0x52   :  { %s370_s19 = sand.u32 127, %s577_s18   ;;  %s581_s20 = sld [smem:[#allocation7 + $0x6]] }
  0x53   :  { %s371_s21 = ssub.s32 0, %s370_s19  ;;  %s584_s23 = sld [smem:[#allocation12 + $0x6]] }
  0x54   :  { %1130 = sst [smem:[#allocation28_spill]] %s899_s8  ;;  %s1184_s21 = smov (!%p367_p10, %s371_s21), %s370_s19 }
  0x55   :  { %s1186_s2 = smov (%p125_p11, %s121_s2), 0  ;;  %p579_p12 = scmp.lt.s32.totalorder %s1184_s21, 0 }
  0x56   :  { %s377_s22 = sadd.s32 128, %s1184_s21  ;;  %s1188_s24 = smov (%p125_p11, %s122_s24), 0 }
  0x57   :  { %s1190_s22 = smov (!%p579_p12, %s377_s22), %s1184_s21  ;;  %s128_s25 = ssub.s32 %s1186_s2, %s1188_s24 }
  0x58   :  { %339 = vrot.lane.b32.xlu0 %v336_v8, %s337_s17  ;;  %s582_s0 = sld [smem:[#allocation9 + $0x6]]  ;;  %s380_s26 = sand.u32 127, %s1190_s22  }
  0x59   :  { %s129_s28 = sadd.s32 128, %s128_s25  ;;  %382 = vrot.lane.b32.xlu1 %v379_v9, %s380_s26  ;;  %p410_p0 = scmp.ne.s32.totalorder %s584_s23, 0 }
  0x5a   :  { %p130_p13 = scmp.lt.s32.totalorder %s129_s28, 0  ;;  %s131_s13 = ssub.s32 0, %s129_s28 }
  0x5b   :  { %s537_s15 = smin.u32 %s131_s13, %s129_s28  ;;  %s433_s18 = sand.u32 127, %s899_s8  }
  0x5c   :  { %s133_s16 = sand.u32 127, %s537_s15   ;;  %s565_s7 = sld [smem:[#allocation7 + $0x4]] }
  0x5d   :  { %s134_s19 = ssub.s32 0, %s133_s16  ;;  %s1194_s20 = smov (%p410_p0, %s581_s20), 0 }
  0x5e   :  { %s1192_s19 = smov (!%p130_p13, %s134_s19), %s133_s16  ;;  %s1196_s0 = smov (%p410_p0, %s582_s0), 0 }
  0x5f   :  { %p539_p1 = scmp.lt.s32.totalorder %s1192_s19, 0  ;;  %s140_s17 = sadd.s32 128, %s1192_s19 }
  0x60   :  { %s413_s21 = ssub.s32 %s1194_s20, %s1196_s0  ;;  %s568_s22 = sld [smem:[#allocation12 + $0x4]] }
  0x61   :  { %s1198_s17 = smov (!%p539_p1, %s140_s17), %s1192_s19  ;;  %435 = vrot.lane.b32.xlu1 %v432_v10, %s433_s18  ;;  %s414_s25 = sadd.s32 128, %s413_s21 }
  0x62   :  { %s142_s23 = sand.u32 127, %s1198_s17   ;;  %p415_p2 = scmp.lt.s32.totalorder %s414_s25, 0 }
  0x63   :  { %144 = vrot.lane.b32.xlu2 %v856_v4, %s142_s23  ;;  %s416_s26 = ssub.s32 0, %s414_s25  ;;  %s566_s13 = sld [smem:[#allocation9 + $0x4]] }
  0x64   :  { %s585_s28 = smin.u32 %s416_s26, %s414_s25  ;;  %s920_s10 = sld [smem:[#allocation2 + $0x7]] }
  0x65   :  { %s418_s15 = sand.u32 127, %s585_s28   ;;  %s922_s8 = sld [smem:[#allocation12 + $0x7]] }
  0x66   :  { %s419_s16 = ssub.s32 0, %s418_s15  ;;  %p314_p3 = scmp.ne.s32.totalorder %s568_s22, 0 }
  0x67   :  { %s1200_s16 = smov (!%p415_p2, %s419_s16), %s418_s15  ;;  %s589_s17 = sld [smem:[#allocation7 + $0x7]] }
  0x68   :  { %p587_p4 = scmp.lt.s32.totalorder %s1200_s16, 0  ;;  %s425_s18 = sadd.s32 128, %s1200_s16 }
  0x69   :  { %s1202_s7 = smov (%p314_p3, %s565_s7), 0  ;;  %s1206_s13 = smov (%p314_p3, %s566_s13), 0 }
  0x6a   :  { %1131 = sst [smem:[#allocation29_spill]] %s920_s10  ;;  %s1204_s18 = smov (!%p587_p4, %s425_s18), %s1200_s16 }
  0x6b   :  { %s428_s19 = sand.u32 127, %s1204_s18   ;;  %s317_s21 = ssub.s32 %s1202_s7, %s1206_s13 }
  0x6c   :  { %430 = vrot.lane.b32.xlu0 %v427_v11, %s428_s19  ;;  %s590_s22 = sld [smem:[#allocation9 + $0x7]]  ;;  %s318_s23 = sadd.s32 128, %s317_s21 }
  0x6d   :  { %p458_p5 = scmp.ne.s32.totalorder %s922_s8, 0  ;;  %p319_p6 = scmp.lt.s32.totalorder %s318_s23, 0 }
  0x6e   :  { %s320_s25 = ssub.s32 0, %s318_s23  ;;  %s123_s28 = sld [smem:[#allocation10]] }
  0x6f   :  { %s569_s26 = smin.u32 %s320_s25, %s318_s23  ;;  %s481_s15 = sand.u32 127, %s920_s10  }
  0x70   :  { %s322_s16 = sand.u32 127, %s569_s26   ;;  %s934_s14 = sld [smem:[#allocation2 + $0x5]] }
  0x71   :  { %s323_s1 = ssub.s32 0, %s322_s16  ;;  %s1210_s17 = smov (%p458_p5, %s589_s17), 0 }
  0x72   :  { %s1208_s1 = smov (!%p319_p6, %s323_s1), %s322_s16  ;;  %s1212_s22 = smov (%p458_p5, %s590_s22), 0 }
  0x73   :  { %p571_p7 = scmp.lt.s32.totalorder %s1208_s1, 0  ;;  %s329_s18 = sadd.s32 128, %s1208_s1 }
  0x74   :  { %483 = vrot.lane.b32.xlu0 %v480_v12, %s481_s15  ;;  %s461_s19 = ssub.s32 %s1210_s17, %s1212_s22  ;;  %s150_s21 = ssub.s32 %s123_s28, %s1188_s24 }
  0x75   :  { %s1214_s18 = smov (!%p571_p7, %s329_s18), %s1208_s1  ;;  %s462_s25 = sadd.s32 128, %s461_s19 }
  0x76   :  { %s332_s23 = sand.u32 127, %s1214_s18   ;;  %p463_p8 = scmp.lt.s32.totalorder %s462_s25, 0  ;;  %v391_v63 = vstv %s934_s14 }
  0x77   :  { %334 = vrot.lane.b32.xlu2 %v331_v13, %s332_s23  ;;  %s464_s26 = ssub.s32 0, %s462_s25  ;;  %s949_s15 = sadd.s32 %s150_s21, %s1186_s2 }
  0x78   :  { %s593_s16 = smin.u32 %s464_s26, %s462_s25  ;;  %s385_s1 = sand.u32 127, %s934_s14   ;;  %v161_v23 = vstv %s949_s15 }
  0x79   :  { %s466_s10 = sand.u32 127, %s593_s16   ;;  %s567_s8 = sld [smem:[#allocation10 + $0x4]]  ;;  %vm976_vm4 = vcmp.lt.s32.totalorder %v968_v18, %v161_v23 }
  0x7a   :  { %s467_s29 = ssub.s32 0, %s466_s10  ;;  %s583_s18 = sld [smem:[#allocation10 + $0x6]] }
  0x7b   :  { %s1216_s29 = smov (!%p463_p8, %s467_s29), %s466_s10  ;;  %s591_s21 = sld [smem:[#allocation10 + $0x7]] }
  0x7c   :  { %p595_p9 = scmp.lt.s32.totalorder %s1216_s29, 0  ;;  %s473_s24 = sadd.s32 128, %s1216_s29 }
  0x7d   :  { %s559_s15 = sld [smem:[#allocation10 + $0x3]] }
  0x7e   :  { %s1218_s24 = smov (!%p595_p9, %s473_s24), %s1216_s29  ;;  %s155_s29 = sadd.s32 %s1186_s2, %s837_s3 }
  0x7f   :  { %387 = vrot.lane.b32.xlu2 %v384_v14, %s385_s1  ;;  %s476_s28 = sand.u32 127, %s1218_s24   ;;  %s341_s19 = ssub.s32 %s567_s8, %s1206_s13  ;;  %v156_v22 = vstv %s155_s29 }
  0x80   :  { %s956_s10 = sadd.s32 %s341_s19, %s1202_s7  ;;  %s437_s23 = ssub.s32 %s583_s18, %s1196_s0  ;;  %vm157_vm1 = vcmp.lt.s32.totalorder %v968_v18, %v156_v22 }
  0x81   :  { %s960_s25 = sadd.s32 %s437_s23, %s1194_s20  ;;  %s485_s26 = ssub.s32 %s591_s21, %s1212_s22  ;;  %vm158_vm2 = vmand %vm154_vm0, %vm157_vm1  ;;  %v353_v62 = vstv %s956_s10 }
  0x82   :  { %s964_s16 = sadd.s32 %s485_s26, %s1210_s17  ;;  %s202_s3 = sadd.s32 %s823_s5, %s1162_s9  ;;  %v449_v22 = vstv %s960_s25 }
  0x83   :  { %s543_s2 = sld [smem:[#allocation10 + $0x1]]  ;;  %s250_s0 = sadd.s32 %s821_s4, %s1156_s27  ;;  %v203_v32 = vstv %s202_s3 }
  0x84   :  { %s551_s13 = sld [smem:[#allocation10 + $0x2]]  ;;  %s298_s22 = sadd.s32 %s826_s6, %s1170_s12  ;;  %v251_v34 = vstv %s250_s0  ;;  %vm204_vm6 = vcmp.lt.s32.totalorder %v968_v18, %v203_v32 }
  0x85   :  { %s1134_s1 = sld [smem:[#allocation24_spill]]  ;;  %v299_v36 = vstv %s298_s22  ;;  %vm252_vm8 = vcmp.lt.s32.totalorder %v968_v18, %v251_v34  ;;  %vm205_vm9 = vmand %vm201_vm5, %vm204_vm6  ;;  %vm500_vm6 = vcmask 1040384  }
  0x86   :  { %s1135_s24 = sld [smem:[#allocation25_spill]]  ;;  %vm300_vm11 = vcmp.lt.s32.totalorder %v968_v18, %v299_v36  ;;  %vm1003_vm12 = vmand %vm249_vm7, %vm252_vm8 }
  0x87   :  { %478 = vrot.lane.b32.xlu2 %v475_v15, %s476_s28  ;;  %vm1008_vm13 = vmand %vm297_vm10, %vm300_vm11  ;;  %s1148_s18 = sld [smem:[#allocation27_spill]]  ;;  %vm504_vm10 = vcmask 1042432  }
  0x88   :  { %s1154_s29 = sld [smem:[#allocation30_spill]] }
  0x89   :  { %s197_s5 = ssub.s32 %s543_s2, %s1164_s11 }
  0x8a   :  { %s245_s4 = ssub.s32 %s551_s13, %s1158_s30  ;;  %s198_s6 = sadd.s32 %s197_s5, %s1162_s9 }
  0x8b   :  { %s346_s11 = sadd.s32 %s1134_s1, %s1202_s7  ;;  %s246_s28 = sadd.s32 %s245_s4, %s1156_s27  ;;  %v209_v43 = vstv %s198_s6  ;;  %v343_v47 = vstv %s1134_s1 }
  0x8c   :  { %s293_s8 = ssub.s32 %s559_s15, %s1135_s24  ;;  %s1142_s30 = sld [smem:[#allocation26_spill]]  ;;  %v347_v48 = vstv %s346_s11  ;;  %v257_v49 = vstv %s246_s28  ;;  %vm210_vm0 = vcmp.lt.s32.totalorder %v968_v18, %v209_v43  ;;  %vm345_vm1 = vcmp.ge.s32.totalorder %v968_v18, %v343_v47 }
  0x8d   :  { %s294_s7 = sadd.s32 %s293_s8, %s1170_s12  ;;  %s1027_s9 = sld [smem:[#allocation10 + $0x5]]  ;;  %vm258_vm5 = vcmp.lt.s32.totalorder %v968_v18, %v257_v49  ;;  %vm1068_vm11 = vcmp.lt.s32.totalorder %v968_v18, %v343_v47 }
  0x8e   :  { %v305_v54 = vstv %s294_s7  ;;  %s1147_s12 = sld [smem:[#allocation28_spill]]  ;;  %s522_s3 = sshll.u32 %s1154_s29, 4  ;;  %s523_s3 = int_to_ptr.hbm [resolvable:$true] %s522_s3 }
  0x8f   :  { %v149_v17 = vpop.permute.xlu2 %148  ;;  %vm306_vm8 = vcmp.lt.s32.totalorder %v968_v18, %v305_v54 }
  0x92   :  { %s394_s27 = sadd.s32 %s934_s14, %s1142_s30 }
  0x93   :  { %v395_v1 = vstv %s394_s27  ;;  %s389_s14 = ssub.s32 %s1027_s9, %s1148_s18 }
  0x94   :  { %s442_s19 = sadd.s32 %s1147_s12, %s1194_s20  ;;  %s1153_s20 = sld [smem:[#allocation29_spill]]  ;;  %v439_v9 = vstv %s1147_s12 }
  0x95   :  { %v443_v10 = vstv %s442_s19  ;;  %s390_s21 = sadd.s32 %s389_s14, %s1142_s30 }
  0x96   :  { %v401_v16 = vstv %s390_s21 }
  0x9a   :  { %s490_s10 = sadd.s32 %s1153_s20, %s1210_s17  ;;  %s757_s17 = smov [#allocation16]  }
  0x9b   :  { %v491_v25 = vstv %s490_s10  ;;  %s520_s23 = sshll.u32 %s757_s17, 4  ;;  %s521_s23 = int_to_ptr.vmem [resolvable:$true] %s520_s23 }
  0x9d   :  { %v244_v19 = vpop.permute.xlu1 %243 }
  0x9e   :  { %v196_v20 = vpop.permute.xlu0 %195 }
  0xa5   :  { %v292_v27 = vpop.permute.xlu1 %291 }
  0xae   :  { %v239_v37 = vpop.permute.xlu1 %238 }
  0xaf   :  { %v254_v42 = vsel %vm1003_vm12, %v244_v19, %v239_v37  ;;  %vm354_vm12 = vcmp.lt.s32.totalorder %v968_v18, %v353_v62 }
  0xb0   :  { %v255_v51 = vrot.slane %v254_v42, 6 }
  0xb2   :  { %v256_v56 = vsel %vm1030_vm15, %v856_v4, %v255_v51 }
  0xb3   :  { %v259_v2 = vsel %vm258_vm5, %v256_v56, 0  ;;  %vm402_vm5 = vcmp.lt.s32.totalorder %v968_v18, %v401_v16 }
  0xb8   :  { %v191_v29 = vpop.permute.xlu0 %190 }
  0xb9   :  { %v206_v39 = vsel %vm205_vm9, %v196_v20, %v191_v29  ;;  %vm502_vm9 = vcmask 1041408  }
  0xba   :  { %v207_v44 = vrot.slane %v206_v39, 7 }
  0xbc   :  { %v208_v52 = vsel %vm1019_vm14, %v856_v4, %v207_v44  ;;  %vm506_vm14 = vcmask 1043456  }
  0xbd   :  { %v145_v24 = vpop.permute.xlu2 %144  ;;  %v211_v57 = vsel %vm210_vm0, %v208_v52, 0  ;;  %vm441_vm0 = vcmp.ge.s32.totalorder %v968_v18, %v439_v9 }
  0xbe   :  { %v159_v26 = vsel %vm158_vm2, %v149_v17, %v145_v24  ;;  %vm348_vm2 = vcmp.lt.s32.totalorder %v968_v18, %v347_v48  ;;  %v487_v24 = vstv %s1153_s20 }
  0xbf   :  { %v983_v28 = vsel %vm153_vm3, %v856_v4, %v159_v26  ;;  %vm1041_vm3 = vcmp.lt.s32.totalorder %v968_v18, %v295_v35  ;;  %vm1051_vm7 = vmand %vm345_vm1, %vm348_vm2  ;;  %vm444_vm1 = vcmp.lt.s32.totalorder %v968_v18, %v443_v10  ;;  %vm392_vm2 = vcmp.lt.s32.totalorder %v968_v18, %v391_v63 }
  0xc0   :  { %v163_v30 = vsel %vm976_vm4, %v983_v28, 0  ;;  %vm396_vm4 = vcmp.lt.s32.totalorder %v968_v18, %v395_v1  ;;  %v497_v35 = vstv %s964_s16 }
  0xc1   :  { %v501_v3 = vsel %vm500_vm6, %v163_v30, %v211_v57  ;;  %vm508_vm6 = vcmask 1044480  }
  0xc2   :  { %v287_v40 = vpop.permute.xlu0 %286  ;;  %v503_v11 = vsel %vm502_vm9, %v501_v3, %v259_v2  ;;  %vm489_vm9 = vcmp.ge.s32.totalorder %v968_v18, %v487_v24 }
  0xc3   :  { %v302_v46 = vsel %vm1008_vm13, %v292_v27, %v287_v40  ;;  %vm393_vm13 = vcmp.ge.s32.totalorder %v968_v18, %v391_v63 }
  0xc4   :  { %v303_v53 = vrot.slane %v302_v46, 5  ;;  %vm397_vm15 = vmand %vm393_vm13, %vm396_vm4  ;;  %vm488_vm13 = vcmp.lt.s32.totalorder %v968_v18, %v487_v24  ;;  %vm498_vm4 = vcmp.lt.s32.totalorder %v968_v18, %v497_v35 }
  0xc6   :  { %v304_v60 = vsel %vm1041_vm3, %v856_v4, %v303_v53  ;;  %vm445_vm3 = vmand %vm441_vm0, %vm444_vm1 }
  0xc7   :  { %v307_v7 = vsel %vm306_vm8, %v304_v60, 0  ;;  %vm450_vm8 = vcmp.lt.s32.totalorder %v968_v18, %v449_v22 }
  0xc8   :  { %v505_v13 = vsel %vm504_vm10, %v503_v11, %v307_v7  ;;  %vm492_vm10 = vcmp.lt.s32.totalorder %v968_v18, %v491_v25 }
  0xca   :  { %v340_v58 = vpop.permute.xlu0 %339 }
  0xcb   :  { %v383_v61 = vpop.permute.xlu1 %382 }
  0xd1   :  { %v335_v0 = vpop.permute.xlu2 %334 }
  0xd2   :  { %v350_v6 = vsel %vm1051_vm7, %v340_v58, %v335_v0  ;;  %vm440_vm7 = vcmp.lt.s32.totalorder %v968_v18, %v439_v9 }
  0xd3   :  { %v351_v8 = vrot.slane %v350_v6, 4  ;;  %v436_v20 = vpop.permute.xlu1 %435 }
  0xd5   :  { %v352_v12 = vsel %vm1068_vm11, %v856_v4, %v351_v8  ;;  %vm510_vm11 = vcmask 1045504  }
  0xd6   :  { %v355_v14 = vsel %vm354_vm12, %v352_v12, 0  ;;  %vm493_vm12 = vmand %vm489_vm9, %vm492_vm10 }
  0xd7   :  { %v507_v15 = vsel %vm506_vm14, %v505_v13, %v355_v14  ;;  %vm512_vm14 = vcmask 1046528  }
  0xd9   :  { %v388_v17 = vpop.permute.xlu2 %387 }
  0xda   :  { %v398_v19 = vsel %vm397_vm15, %v388_v17, %v383_v61 }
  0xdb   :  { %v399_v21 = vrot.slane %v398_v19, 3 }
  0xdd   :  { %v400_v26 = vsel %vm392_vm2, %v856_v4, %v399_v21 }
  0xde   :  { %v431_v23 = vpop.permute.xlu0 %430  ;;  %v403_v28 = vsel %vm402_vm5, %v400_v26, 0 }
  0xdf   :  { %v446_v27 = vsel %vm445_vm3, %v436_v20, %v431_v23  ;;  %v509_v30 = vsel %vm508_vm6, %v507_v15, %v403_v28 }
  0xe0   :  { %v447_v29 = vrot.slane %v446_v27, 2 }
  0xe1   :  { %v479_v33 = vpop.permute.xlu2 %478 }
  0xe2   :  { %v448_v31 = vsel %vm440_vm7, %v856_v4, %v447_v29 }
  0xe3   :  { %v451_v32 = vsel %vm450_vm8, %v448_v31, 0 }
  0xe4   :  { %v511_v34 = vsel %vm510_vm11, %v509_v30, %v451_v32 }
  0xe6   :  { %v484_v36 = vpop.permute.xlu0 %483 }
  0xe7   :  { %v494_v37 = vsel %vm493_vm12, %v484_v36, %v479_v33 }
  0xe8   :  { %v495_v38 = vrot.slane %v494_v37, 1 }
  0xea   :  { %v496_v39 = vsel %vm488_vm13, %v856_v4, %v495_v38 }
  0xeb   :  { %v499_v40 = vsel %vm498_vm4, %v496_v39, 0 }
  0xec   :  { %v513_v41 = vsel %vm512_vm14, %v511_v34, %v499_v40 }
  0xed   :  { %514 = vst [vmem:[#allocation16] sm:$0xff] %v513_v41 }
  0xee   :  { %525 = dma.vmem_to_hbm [thread:$0]  %s521_s23, 128, %s523_s3, [#allocation4]  }
  0xef   :  { %748 = dma.done.wait [#allocation4], 128  }
  0xf0   :  { %749 = vsyncadd [#allocation4], 4294967168 }
  0xf1   :  { %530 = vsyncpa [#allocation3], 1 }
  0xf2   :  { %531 = vsyncpa [#allocation15], 1 }
  0xf3   :  { %532 = vsyncpa [#allocation4], 1 }
  0xf4   :  { %533 = vsyncpa [#allocation5], 1 }
  0xf5   :  { %534 = vsyncpa [#allocation8], 1 }
  0xf6   :  { %535 = vsyncpa [#allocation6], 1 }
  0xf7   :  { %536 = vsyncpa [#allocation11], 1 }

</bundles_post_ra>
